<compile_context>
chip_gen: v7x
topology: tpu7x:2x2x1
jax: 0.10.0
libtpu: 0.0.40
codegen_flags: <defaults>
</compile_context>

<pallas_src>
import functools

import jax
import jax.numpy as jnp
from jax.experimental import pallas as pl
from jax.experimental.pallas import tpu as pltpu

_LANES = 128
_SUBLANES = 8
_EPS = 1e-6

# ~4 MiB per input tile -> ~8 MiB HBM read per grid step (2 inputs).
# Double-buffered VMEM footprint: 2 inputs x 2 buffers x 4 MiB = 16 MiB.
_TARGET_TILE_BYTES = 4 * 1024 * 1024
# Inner-loop slice of the resident tile: 1024 rows x 128 lanes = 128K elements
# (~0.5 MiB of f32 intermediates per temporary), keeps VMEM pressure low.
_CHUNK_ROWS = 1024
# Fits v7x's 64 MiB physical VMEM and lifts v5e's 16 MiB scoped default.
_VMEM_LIMIT_BYTES = 32 * 1024 * 1024


def _sqdiff_kernel(x_ref, y_ref, o_ref, *, rows_total, eff_br, chunk_rows,
                   steps, n_full_blocks, blocks_total):
    """Folds sum((x - y)^2) of this block into a tiny (8,128) per-core partial."""
    c = pl.program_id(0)              # TensorCore split ("parallel")
    i = pl.program_id(1)              # reduction steps ("arbitrary")
    gb = c * steps + i                # global block index (may overhang)

    n_chunks = eff_br // chunk_rows
    align = chunk_rows & -chunk_rows  # largest power-of-2 divisor (true hint)

    @pl.when(i == 0)
    def _():
        o_ref[...] = jnp.zeros_like(o_ref)

    def chunk_sq(k):
        off = pl.multiple_of(k * chunk_rows, align)
        d = (x_ref[pl.ds(off, chunk_rows), :].astype(jnp.float32)
             - y_ref[pl.ds(off, chunk_rows), :].astype(jnp.float32))
        return d * d

    # Full, in-bounds blocks: no mask, pure VPU work folded down to (8,128).
    @pl.when(gb < n_full_blocks)
    def _():
        def body(k, acc):
            return acc + jnp.sum(
                chunk_sq(k).reshape(-1, _SUBLANES, _LANES), axis=0)
        o_ref[...] += jax.lax.fori_loop(
            0, n_chunks, body, jnp.zeros((_SUBLANES, _LANES), jnp.float32))

    if n_full_blocks < blocks_total:
        # Exactly one ragged last block exists; pay for the iota/compare/select
        # only on that step.  Rows past rows_total were never DMA'd and hold
        # stale VMEM -- jnp.where discards whatever (x-y)^2 produced there
        # (NaN/Inf included), so the result is exact.
        row0 = n_full_blocks * eff_br

        @pl.when(gb == n_full_blocks)
        def _():
            def body(k, acc):
                s = chunk_sq(k)
                rid = (jax.lax.broadcasted_iota(jnp.int32, s.shape, 0)
                       + row0 + k * chunk_rows)
                s = jnp.where(rid < rows_total, s, 0.0)
                return acc + jnp.sum(s.reshape(-1, _SUBLANES, _LANES), axis=0)
            o_ref[...] += jax.lax.fori_loop(
                0, n_chunks, body, jnp.zeros((_SUBLANES, _LANES), jnp.float32))
    # gb >= blocks_total (overhang step of the odd-block 2-core split):
    # contributes nothing; its input block index was clamped in the index map.


def rmse_loss(x, y, *, block_rows=None, chunk_rows=None):
    """loss = sqrt(mean((x - y)^2) + 1e-6), mean over all elements."""
    assert x.shape == y.shape, "x and y must have identical shapes"
    n_total = x.size
    assert n_total > 0

    xf = jnp.ravel(x)
    yf = jnp.ravel(y)

    itemsize = max(jnp.dtype(x.dtype).itemsize, jnp.dtype(y.dtype).itemsize)
    # Row granularity = sublane packing: 8 f32 / 16 bf16 / 32 int8.
    sub = _SUBLANES * max(1, 4 // max(1, itemsize))

    rem = n_total % _LANES
    n_aligned = n_total - rem
    rows_total = n_aligned // _LANES

    if rows_total < sub:
        # Too small to tile sensibly -- plain JAX fallback (tiny inputs only).
        d = xf.astype(jnp.float32) - yf.astype(jnp.float32)
        total_sq = jnp.sum(d * d)
    else:
        # The <128-element ragged tail is summed in plain JAX; the kernel sees
        # only the lane-aligned prefix (no full-array jnp.pad copy).
        if rem:
            dt = (xf[n_aligned:].astype(jnp.float32)
                  - yf[n_aligned:].astype(jnp.float32))
            tail_sq = jnp.sum(dt * dt)
            x2d = xf[:n_aligned].reshape(rows_total, _LANES)
            y2d = yf[:n_aligned].reshape(rows_total, _LANES)
        else:
            tail_sq = jnp.float32(0.0)
            x2d = xf.reshape(rows_total, _LANES)   # copy-free bitcast
            y2d = yf.reshape(rows_total, _LANES)

        # Rows per grid step: constant ~4 MiB per input tile regardless of
        # dtype.  User-supplied block_rows is capped to keep VMEM safe.
        auto_rows = _TARGET_TILE_BYTES // (_LANES * itemsize)
        eff_br = auto_rows if block_rows is None else int(block_rows)
        eff_br = max(sub, (min(eff_br, auto_rows, rows_total) // sub) * sub)

        # Inner chunk size: multiple of the packing granularity, divides eff_br.
        eff_ch = _CHUNK_ROWS if chunk_rows is None else int(chunk_rows)
        eff_ch = max(sub, (min(eff_ch, eff_br) // sub) * sub)
        if eff_br > eff_ch:
            eff_br = (eff_br // eff_ch) * eff_ch
        else:
            eff_ch = eff_br

        blocks_total = -(-rows_total // eff_br)          # ceil div
        n_full_blocks = rows_total // eff_br

        # Always split across the two TensorCores of a v7x chip when there is
        # more than one block (harmless sequential loop of 2 on v5e/v6e).
        n_outer = 2 if blocks_total >= 2 else 1
        steps = -(-blocks_total // n_outer)

        kernel = functools.partial(
            _sqdiff_kernel,
            rows_total=rows_total, eff_br=eff_br, chunk_rows=eff_ch,
            steps=steps, n_full_blocks=n_full_blocks, blocks_total=blocks_total)

        # Clamp so the odd-block overhang step never issues an OOB DMA; the
        # kernel skips that step's contribution entirely.
        def in_map(c, i):
            return (jnp.minimum(c * steps + i, blocks_total - 1), 0)

        partials = pl.pallas_call(
            kernel,
            out_shape=jax.ShapeDtypeStruct((n_outer * _SUBLANES, _LANES),
                                           jnp.float32),
            grid_spec=pltpu.PrefetchScalarGridSpec(
                num_scalar_prefetch=0,
                grid=(n_outer, steps),
                in_specs=[
                    pl.BlockSpec((eff_br, _LANES), in_map),
                    pl.BlockSpec((eff_br, _LANES), in_map),
                ],
                out_specs=pl.BlockSpec((_SUBLANES, _LANES),
                                       lambda c, i: (c, 0)),
            ),
            compiler_params=pltpu.CompilerParams(
                dimension_semantics=("parallel", "arbitrary"),
                vmem_limit_bytes=_VMEM_LIMIT_BYTES,
            ),
        )(x2d, y2d)

        # Tiny final reduce over <= 2 * 8 * 128 partials + the JAX tail.
        total_sq = jnp.sum(partials) + tail_sq

    mse = total_sq / jnp.float32(n_total)
    return jnp.sqrt(mse + jnp.float32(_EPS))


if __name__ == "__main__":
    key = jax.random.PRNGKey(0)

    def ref_loss(a, b):
        d = a.astype(jnp.float32) - b.astype(jnp.float32)
        return jnp.sqrt(jnp.mean(d * d) + _EPS)

    checks = []

    # 1) NCHW-style regression output, f32: single full block, single core.
    k1, k2, key = jax.random.split(key, 3)
    x = jax.random.normal(k1, (2, 4, 16, 16), dtype=jnp.float32)
    y = jax.random.normal(k2, (2, 4, 16, 16), dtype=jnp.float32)
    out = rmse_loss(x, y)
    jax.block_until_ready(out)
    checks.append((out, ref_loss(x, y)))

    # 2) 20 rows -> 2 blocks (2-way TensorCore split), ragged last block.
    k1, k2, key = jax.random.split(key, 3)
    x = jax.random.normal(k1, (2, 5, 16, 16), dtype=jnp.float32)
    y = jax.random.normal(k2, (2, 5, 16, 16), dtype=jnp.float32)
    out = rmse_loss(x, y)
    jax.block_until_ready(out)
    checks.append((out, ref_loss(x, y)))

    # 3) bf16, odd block count (overhang step on the 2-core split) + row mask.
    k1, k2, key = jax.random.split(key, 3)
    xb = jax.random.normal(k1, (2, 8, 40, 16), dtype=jnp.bfloat16)
    yb = jax.random.normal(k2, (2, 8, 40, 16), dtype=jnp.bfloat16)
    out = rmse_loss(xb, yb, block_rows=32)
    jax.block_until_ready(out)
    checks.append((out, ref_loss(xb, yb)))

    # 4) f32 with a multi-chunk inner loop (chunk_rows < block_rows).
    k1, k2, key = jax.random.split(key, 3)
    x = jax.random.normal(k1, (2, 8, 40, 16), dtype=jnp.float32)
    y = jax.random.normal(k2, (2, 8, 40, 16), dtype=jnp.float32)
    out = rmse_loss(x, y, block_rows=32, chunk_rows=8)
    jax.block_until_ready(out)
    checks.append((out, ref_loss(x, y)))

    # 5) numel % 128 != 0: kernel on the aligned prefix + plain-JAX tail.
    k1, k2, key = jax.random.split(key, 3)
    x = jax.random.normal(k1, (3, 5, 7, 11), dtype=jnp.float32)
    y = jax.random.normal(k2, (3, 5, 7, 11), dtype=jnp.float32)
    out = rmse_loss(x, y)
    jax.block_until_ready(out)
    checks.append((out, ref_loss(x, y)))

    for got, want in checks:
        assert jnp.allclose(got, want, rtol=1e-5, atol=1e-6), (got, want)

    print("KERNEL_OK")
</pallas_src>

<mosaic_0001>
module attributes {stable_mosaic.version = 11 : i64} {
  func.func @_sqdiff_kernel(%arg0: i32, %arg1: i32, %arg2: memref<16x128xf32, #tpu.memory_space<vmem>>, %arg3: memref<16x128xf32, #tpu.memory_space<vmem>>, %arg4: memref<8x128xf32, #tpu.memory_space<vmem>>) attributes {dimension_semantics = [#tpu.dimension_semantics<parallel>, #tpu.dimension_semantics<arbitrary>], iteration_bounds = array<i64: 1, 1>, scalar_prefetch = 0 : i64, scratch_operands = 0 : i64, tpu.core_type = #tpu.core_type<tc>, window_params = [{transform_indices = @transform_0, window_bounds = array<i64: 16, 128>}, {transform_indices = @transform_1, window_bounds = array<i64: 16, 128>}, {transform_indices = @transform_2, window_bounds = array<i64: 8, 128>}]} {
    %c1_i32 = arith.constant 1 : i32
    %0 = arith.muli %arg0, %c1_i32 : i32
    %1 = arith.addi %0, %arg1 : i32
    %c0_i32 = arith.constant 0 : i32
    %2 = arith.cmpi eq, %arg1, %c0_i32 : i32
    %3 = arith.extui %2 : i1 to i32
    %c0_i32_0 = arith.constant 0 : i32
    %4 = arith.cmpi ne, %3, %c0_i32_0 : i32
    scf.if %4 {
      %cst = arith.constant 0.000000e+00 : f32
      %8 = vector.broadcast %cst : f32 to vector<8x128xf32>
      %c0 = arith.constant 0 : index
      %c0_3 = arith.constant 0 : index
      %9 = vector.load %arg4[%c0, %c0_3] : memref<8x128xf32, #tpu.memory_space<vmem>>, vector<8x128xf32>
      tpu.vector_store %arg4[%c0, %c0_3], %8 {strides = array<i32>} : memref<8x128xf32, #tpu.memory_space<vmem>>, vector<8x128xf32>,
    } else {
    }
    %c1_i32_1 = arith.constant 1 : i32
    %5 = arith.cmpi slt, %1, %c1_i32_1 : i32
    %6 = arith.extui %5 : i1 to i32
    %c0_i32_2 = arith.constant 0 : i32
    %7 = arith.cmpi ne, %6, %c0_i32_2 : i32
    scf.if %7 {
      %c0 = arith.constant 0 : index
      %c0_3 = arith.constant 0 : index
      %8 = vector.load %arg4[%c0, %c0_3] : memref<8x128xf32, #tpu.memory_space<vmem>>, vector<8x128xf32>
      %cst = arith.constant 0.000000e+00 : f32
      %9 = vector.broadcast %cst : f32 to vector<8x128xf32>
      %c0_i32_4 = arith.constant 0 : i32
      %c16_i32 = arith.constant 16 : i32
      %10 = arith.muli %c0_i32_4, %c16_i32 : i32
      %11 = tpu.assume_multiple %10, 16 : i32
      %12 = arith.index_cast %11 : i32 to index
      %c0_5 = arith.constant 0 : index
      %13 = vector.load %arg2[%12, %c0_5] : memref<16x128xf32, #tpu.memory_space<vmem>>, vector<16x128xf32>
      %14 = arith.index_cast %11 : i32 to index
      %c0_6 = arith.constant 0 : index
      %15 = vector.load %arg3[%14, %c0_6] : memref<16x128xf32, #tpu.memory_space<vmem>>, vector<16x128xf32>
      %16 = arith.subf %13, %15 : vector<16x128xf32>
      %17 = arith.mulf %16, %16 : vector<16x128xf32>
      %18 = vector.shape_cast %17 : vector<16x128xf32> to vector<2x8x128xf32>
      %cst_7 = arith.constant dense<0.000000e+00> : vector<8x128xf32>
      %19 = vector.multi_reduction <add>, %18, %cst_7 [0] : vector<2x8x128xf32> to vector<8x128xf32>
      %20 = arith.addf %9, %19 : vector<8x128xf32>
      %c1_i32_8 = arith.constant 1 : i32
      %21 = arith.addf %8, %20 : vector<8x128xf32>
      %c0_9 = arith.constant 0 : index
      %c0_10 = arith.constant 0 : index
      %22 = vector.load %arg4[%c0_9, %c0_10] : memref<8x128xf32, #tpu.memory_space<vmem>>, vector<8x128xf32>
      tpu.vector_store %arg4[%c0_9, %c0_10], %21 {strides = array<i32>} : memref<8x128xf32, #tpu.memory_space<vmem>>, vector<8x128xf32>,
    } else {
    }
    return
  }
  func.func @transform_0(%arg0: i32, %arg1: i32) -> (i32, i32) {
    %c1_i32 = arith.constant 1 : i32
    %0 = arith.muli %arg0, %c1_i32 : i32
    %1 = arith.addi %0, %arg1 : i32
    %c0_i32 = arith.constant 0 : i32
    %2 = arith.minsi %1, %c0_i32 : i32
    %c0_i32_0 = arith.constant 0 : i32
    %c0_i32_1 = arith.constant 0 : i32
    return %2, %c0_i32_0 : i32, i32
  }
  func.func @transform_1(%arg0: i32, %arg1: i32) -> (i32, i32) {
    %c1_i32 = arith.constant 1 : i32
    %0 = arith.muli %arg0, %c1_i32 : i32
    %1 = arith.addi %0, %arg1 : i32
    %c0_i32 = arith.constant 0 : i32
    %2 = arith.minsi %1, %c0_i32 : i32
    %c0_i32_0 = arith.constant 0 : i32
    %c0_i32_1 = arith.constant 0 : i32
    return %2, %c0_i32_0 : i32, i32
  }
  func.func @transform_2(%arg0: i32, %arg1: i32) -> (i32, i32) {
    %c0_i32 = arith.constant 0 : i32
    %c0_i32_0 = arith.constant 0 : i32
    return %arg0, %c0_i32 : i32, i32
  }
}

</mosaic_0001>

<bundles_post_ra>
// kernel: tpu_custom_call.1
= control target key start
LH: loop header
LB: loop body
LE: loop exit
PB: predicated region body
PF: predicated region fallthrough
CT: control target
= control target key end

     0   :  { %7 = vsyncpa [#allocation3], 0  ;;  %s237_s0 = inlined_call_operand.hbm [shape: f32[16,128], index: 0, kind: input, shape index: {}]   ;;  %s238_s1 = inlined_call_operand.hbm [shape: f32[16,128], index: 1, kind: input, shape index: {}]   ;;  %s239_s2 = inlined_call_operand.hbm [shape: f32[8,128], index: 2, kind: output, shape index: {}]  }
   0x1   :  { %8 = vsyncpa [#allocation6], 0 }
   0x2   :  { %9 = vsyncpa [#allocation4], 0  ;;  %s181_s9 = smov [#allocation2]   ;;  %s109_s13 = scalar_lea.hbm %s237_s0, 256 }
   0x3   :  { %s21_s10 = sshll.u32 %s181_s9, 4  ;;  %p110_p0 = scmp.ne.s32.totalorder %s237_s0, %s109_s13  ;;  %s22_s10 = int_to_ptr.vmem [resolvable:$true] %s21_s10 }
   0x4   :  { %p113_p1 = scmp.lt.u32.totalorder %s109_s13, %s237_s0 }
   0x6   :  { %p115_p2 = pnand %p113_p1, %p110_p0 }
   0x8   :  { %118 = shalt.err (!%p115_p2)
}
   0x9   :  { %s119_s18 = scalar_lea.vmem %s22_s10, 256  ;;  %p124_p4 = scmp.lt.s32.totalorder %s22_s10, %s22_s10 }
   0xa   :  { %p120_p3 = scmp.ne.s32.totalorder %s22_s10, %s119_s18  ;;  %p125_p5 = scmp.lt.s32.totalorder %s119_s18, %s119_s18 }
   0xc   :  { %p126_p6 = por %p125_p5, %p124_p4 }
   0xe   :  { %p127_p7 = pnand %p126_p6, %p120_p3 }
  0x10   :  { %130 = shalt.err (!%p127_p7)
}
  0x11   :  { %s182_s19 = smov 128   ;;  %s183_s20 = smov 8  }
  0x12   :  { %27 = dma.hbm_to_vmem [thread:$0]  %s237_s0, 256, %s22_s10, [#allocation3], %s182_s19, %s182_s19, %s183_s20  }
  0x13   :  { %s184_s23 = smov [#allocation5]   ;;  %s131_s27 = scalar_lea.hbm %s238_s1, 256 }
  0x14   :  { %s39_s24 = sshll.u32 %s184_s23, 4  ;;  %p132_p8 = scmp.ne.s32.totalorder %s238_s1, %s131_s27  ;;  %s40_s24 = int_to_ptr.vmem [resolvable:$true] %s39_s24 }
  0x15   :  { %p135_p9 = scmp.lt.u32.totalorder %s131_s27, %s238_s1 }
  0x17   :  { %p137_p10 = pnand %p135_p9, %p132_p8 }
  0x19   :  { %140 = shalt.err (!%p137_p10)
}
  0x1a   :  { %s141_s4 = scalar_lea.vmem %s40_s24, 256  ;;  %p146_p12 = scmp.lt.s32.totalorder %s40_s24, %s40_s24 }
  0x1b   :  { %p142_p11 = scmp.ne.s32.totalorder %s40_s24, %s141_s4  ;;  %p147_p13 = scmp.lt.s32.totalorder %s141_s4, %s141_s4 }
  0x1d   :  { %p148_p0 = por %p147_p13, %p146_p12 }
  0x1f   :  { %p149_p1 = pnand %p148_p0, %p142_p11 }
  0x21   :  { %152 = shalt.err (!%p149_p1)
}
  0x22   :  { %45 = dma.hbm_to_vmem [thread:$0]  %s238_s1, 256, %s40_s24, [#allocation6], %s182_s19, %s182_s19, %s183_s20  }
  0x23   :  { %175 = dma.done.wait [#allocation3], 256  }
  0x24   :  { %176 = vsyncadd [#allocation3], 4294967040 }
  0x25   :  { %177 = dma.done.wait [#allocation6], 256  }
  0x26   :  { %178 = vsyncadd [#allocation6], 4294967040  ;;  %v71_v0 = vld [vmem:[#allocation2] sm:$0xff]  ;;  %v72_v1 = vld [vmem:[#allocation2 + $0x8] sm:$0xff]  ;;  %s185_s6 = smov [#allocation7]  }
  0x27   :  { %v73_v2 = vld [vmem:[#allocation5] sm:$0xff]  ;;  %v74_v3 = vld [vmem:[#allocation5 + $0x8] sm:$0xff]  ;;  %s89_s7 = sshll.u32 %s185_s6, 4  ;;  %s90_s7 = int_to_ptr.vmem [resolvable:$true] %s89_s7 }
  0x28   :  { %v75_v4 = vsub.f32 %v71_v0, %v73_v2  ;;  %v76_v5 = vsub.f32 %v72_v1, %v74_v3  ;;  %s153_s8 = scalar_lea.vmem %s90_s7, 128  ;;  %p158_p3 = scmp.lt.s32.totalorder %s90_s7, %s90_s7 }
  0x29   :  { %p154_p2 = scmp.ne.s32.totalorder %s90_s7, %s153_s8  ;;  %p159_p4 = scmp.lt.s32.totalorder %s153_s8, %s153_s8 }
  0x2a   :  { %v77_v6 = vmul.f32 %v75_v4, %v75_v4  ;;  %v78_v7 = vmul.f32 %v76_v5, %v76_v5 }
  0x2b   :  { %p160_p5 = por %p159_p4, %p158_p3 }
  0x2c   :  { %v79_v8 = vadd.f32 %v78_v7, %v77_v6 }
  0x2d   :  { %p161_p6 = pnand %p160_p5, %p154_p2 }
  0x2e   :  { %82 = vst [vmem:[#allocation7] sm:$0xff] %v79_v8 }
  0x2f   :  { %164 = shalt.err (!%p161_p6)
}
  0x30   :  { %s165_s10 = scalar_lea.hbm %s239_s2, 128 }
  0x31   :  { %p166_p7 = scmp.ne.s32.totalorder %s239_s2, %s165_s10  ;;  %p169_p8 = scmp.lt.u32.totalorder %s165_s10, %s239_s2 }
  0x33   :  { %p171_p9 = pnand %p169_p8, %p166_p7 }
  0x35   :  { %174 = shalt.err (!%p171_p9)
}
  0x36   :  { %92 = dma.vmem_to_hbm [thread:$0]  %s90_s7, 128, %s239_s2, [#allocation4]  }
  0x37   :  { %179 = dma.done.wait [#allocation4], 128  }
  0x38   :  { %180 = vsyncadd [#allocation4], 4294967168 }
  0x39   :  { %96 = vsyncpa [#allocation3], 1 }
  0x3a   :  { %97 = vsyncpa [#allocation6], 1 }
  0x3b   :  { %98 = vsyncpa [#allocation4], 1 }

</bundles_post_ra>
